<compile_context>
chip_gen: v5e
topology: v5e:2x2
jax: 0.10.0
libtpu: 0.0.40
codegen_flags: <defaults>
</compile_context>

<pallas_src>
import jax
import jax.numpy as jnp
from jax.experimental import pallas as pl
from jax.experimental.pallas import tpu as pltpu

LINEAR_SCALE = 5000.0
BASE = 1.0e-4

_SMALL_FASTPATH_BYTES = 256 << 10   # below this, let XLA fuse it
_TILE_OUT_BYTE_BUDGET = 2 << 20     # ~2 MiB of output per grid step


def _round_up(x: int, m: int) -> int:
    return ((x + m - 1) // m) * m


def _pos_enc_kernel(noise_ref, exps_ref, out_ref):
    # noise_ref: (TILE_B, 1) f32, exps_ref: (1, half) f32,
    # out_ref:   (TILE_B, 2*half) out_dtype
    half = exps_ref.shape[1]
    scaled = LINEAR_SCALE * noise_ref[...]            # (TILE_B, 1), hoisted scalar mul
    args = scaled * exps_ref[...]                     # (TILE_B, half) via broadcast

    if half % 128 == 0:
        # Both halves land on 128-lane-aligned boundaries: two unmasked
        # full-width stores, no in-register concat of the double-width block.
        out_ref[:, :half] = jnp.sin(args).astype(out_ref.dtype)
        out_ref[:, half:] = jnp.cos(args).astype(out_ref.dtype)
    else:
        # half < 128 (or not lane-aligned): single store of the full row; the
        # output last dim equals the full array dim so the block is legal.
        out_ref[...] = jnp.concatenate(
            [jnp.sin(args), jnp.cos(args)], axis=-1
        ).astype(out_ref.dtype)


def _choose_tile_b(b: int, out_channels: int, itemsize: int) -> int:
    """Batch tile from the output-byte budget, capped for 2-TC (v7x) megacore."""
    tb = max(8, _TILE_OUT_BYTE_BUDGET // max(1, out_channels * itemsize))
    if b >= 16:
        # Give the parallel batch axis at least 2 grid steps when possible.
        tb = min(tb, _round_up(pl.cdiv(b, 2), 8))
    tb = max(8, (tb // 8) * 8)
    if tb >= b:
        return b  # single block covering the whole batch (full-dim block is legal)
    return tb


def _reference(noise_level: jax.Array, n_channels: int) -> jax.Array:
    """Plain-JAX expression mirroring the PyTorch module (also the fast path)."""
    if noise_level.ndim > 1:
        noise_level = jnp.squeeze(noise_level, axis=-1)
    noise_level = noise_level.astype(jnp.float32)
    half = n_channels // 2
    exps = BASE ** (jnp.arange(half, dtype=jnp.float32) / float(half))
    args = LINEAR_SCALE * noise_level[:, None] * exps[None, :]
    return jnp.concatenate([jnp.sin(args), jnp.cos(args)], axis=-1)


def positional_encoding(
    noise_level: jax.Array,
    n_channels: int,
    *,
    tile_b: int | None = None,
    out_dtype=jnp.float32,
    force_pallas: bool = False,
) -> jax.Array:
    """Pallas implementation of PositionalEncoding.forward."""
    # Match the torch squeeze(-1) behaviour for (B, 1) inputs.
    if noise_level.ndim > 1:
        noise_level = jnp.squeeze(noise_level, axis=-1)
    noise_level = noise_level.astype(jnp.float32)
    b = noise_level.shape[0]

    half = n_channels // 2
    out_channels = 2 * half  # identical to torch.cat([sin, cos], -1), also for odd n_channels
    itemsize = jnp.dtype(out_dtype).itemsize

    # Small-problem fast path: launch overhead + HBM round-trip of the output
    # dwarf the compute; let XLA fuse it into the consumer instead.
    if not force_pallas and b * out_channels * itemsize < _SMALL_FASTPATH_BYTES:
        return _reference(noise_level, n_channels).astype(out_dtype)

    # Exponent table computed exactly like the reference (pow, not exp/log),
    # so the in-kernel `args` are bit-identical to the reference computation.
    exps = (BASE ** (jnp.arange(half, dtype=jnp.float32) / float(half))).reshape(1, half)
    noise2d = noise_level.reshape(b, 1)

    if tile_b is None:
        tb = _choose_tile_b(b, out_channels, itemsize)
    else:
        tb = int(tile_b)
        if tb >= b:
            tb = b
        else:
            tb = max(8, (tb // 8) * 8)  # sublane rule: multiple of 8 unless full dim

    grid = (pl.cdiv(b, tb),)

    cost = pl.CostEstimate(
        flops=3 * b * out_channels,
        transcendentals=b * out_channels,
        bytes_accessed=b * 4 + half * 4 + b * out_channels * itemsize,
    )

    return pl.pallas_call(
        _pos_enc_kernel,
        out_shape=jax.ShapeDtypeStruct((b, out_channels), out_dtype),
        grid=grid,
        in_specs=[
            pl.BlockSpec((tb, 1), lambda i: (i, 0)),       # noise column, tiled over batch
            pl.BlockSpec((1, half), lambda i: (0, 0)),     # exps table, same block every step
        ],
        out_specs=pl.BlockSpec((tb, out_channels), lambda i: (i, 0)),
        compiler_params=pltpu.CompilerParams(
            dimension_semantics=("parallel",),
        ),
        cost_estimate=cost,
    )(noise2d, exps)


if __name__ == "__main__":
    key = jax.random.PRNGKey(0)

    # Case 1: small conditioning batch, (B, 1) input (exercises the squeeze(-1)
    # path and the concat/single-store kernel branch, half=16 < 128).
    batch, n_channels = 8, 32
    noise_level = jax.random.uniform(key, (batch, 1), dtype=jnp.float32)

    out = positional_encoding(noise_level, n_channels, force_pallas=True)
    out = jax.block_until_ready(out)
    ref = _reference(noise_level, n_channels)
    assert out.shape == (batch, n_channels), out.shape
    # args reach ~5000, so sin/cos argument-reduction differences (Mosaic vs.
    # XLA) can be a few 1e-4; args themselves are bit-identical.
    assert jnp.allclose(out, ref, atol=1e-3, rtol=1e-3), "mismatch vs reference (case 1)"

    # Auto-dispatch (small output -> plain-XLA fast path) must agree too.
    out_fast = jax.block_until_ready(positional_encoding(noise_level, n_channels))
    assert jnp.allclose(out_fast, ref, atol=1e-6, rtol=1e-6), "fast path mismatch"

    # Case 2: multi-step grid + lane-aligned two-store branch (half=128).
    batch2, n_channels2 = 64, 256
    key2 = jax.random.PRNGKey(0)
    noise2 = jax.random.uniform(key2, (batch2,), dtype=jnp.float32)
    out2 = positional_encoding(noise2, n_channels2, tile_b=16, force_pallas=True)
    out2 = jax.block_until_ready(out2)
    ref2 = _reference(noise2, n_channels2)
    assert out2.shape == (batch2, n_channels2), out2.shape
    assert jnp.allclose(out2, ref2, atol=1e-3, rtol=1e-3), "mismatch vs reference (case 2)"

    print("KERNEL_OK")
</pallas_src>

<mosaic_0001>
module attributes {stable_mosaic.version = 11 : i64} {
  func.func @_pos_enc_kernel(%arg0: i32, %arg1: memref<8x1xf32, #tpu.memory_space<vmem>>, %arg2: memref<1x16xf32, #tpu.memory_space<vmem>>, %arg3: memref<8x32xf32, #tpu.memory_space<vmem>>) attributes {dimension_semantics = [#tpu.dimension_semantics<parallel>], iteration_bounds = array<i64: 1>, scalar_prefetch = 0 : i64, scratch_operands = 0 : i64, tpu.core_type = #tpu.core_type<tc>, window_params = [{transform_indices = @transform_0, window_bounds = array<i64: 8, 1>}, {pipeline_mode = #tpu.pipeline_mode<synchronous>, transform_indices = @transform_1, window_bounds = array<i64: 1, 16>}, {transform_indices = @transform_2, window_bounds = array<i64: 8, 32>}]} {
    %c0 = arith.constant 0 : index
    %c0_0 = arith.constant 0 : index
    %0 = vector.load %arg1[%c0, %c0_0] : memref<8x1xf32, #tpu.memory_space<vmem>>, vector<8x1xf32>
    %cst = arith.constant 5.000000e+03 : f32
    %1 = vector.broadcast %cst : f32 to vector<8x1xf32>
    %2 = arith.mulf %1, %0 : vector<8x1xf32>
    %c0_1 = arith.constant 0 : index
    %c0_2 = arith.constant 0 : index
    %3 = vector.load %arg2[%c0_1, %c0_2] : memref<1x16xf32, #tpu.memory_space<vmem>>, vector<1x16xf32>
    %4 = vector.broadcast %2 : vector<8x1xf32> to vector<8x16xf32>
    %5 = vector.broadcast %3 : vector<1x16xf32> to vector<8x16xf32>
    %6 = arith.mulf %4, %5 : vector<8x16xf32>
    %7 = math.sin %6 : vector<8x16xf32>
    %8 = math.cos %6 : vector<8x16xf32>
    %9 = tpu.concatenate %7, %8 in 1 : vector<8x16xf32>, vector<8x16xf32> -> vector<8x32xf32>
    %c0_3 = arith.constant 0 : index
    %c0_4 = arith.constant 0 : index
    %10 = vector.load %arg3[%c0_3, %c0_4] : memref<8x32xf32, #tpu.memory_space<vmem>>, vector<8x32xf32>
    tpu.vector_store %arg3[%c0_3, %c0_4], %9 {strides = array<i32>} : memref<8x32xf32, #tpu.memory_space<vmem>>, vector<8x32xf32>,
    return
  }
  func.func @transform_0(%arg0: i32) -> (i32, i32) {
    %c0_i32 = arith.constant 0 : i32
    %c0_i32_0 = arith.constant 0 : i32
    return %arg0, %c0_i32 : i32, i32
  }
  func.func @transform_1(%arg0: i32) -> (i32, i32) {
    %c0_i32 = arith.constant 0 : i32
    %c0_i32_0 = arith.constant 0 : i32
    %c0_i32_1 = arith.constant 0 : i32
    return %c0_i32, %c0_i32_0 : i32, i32
  }
  func.func @transform_2(%arg0: i32) -> (i32, i32) {
    %c0_i32 = arith.constant 0 : i32
    %c0_i32_0 = arith.constant 0 : i32
    return %arg0, %c0_i32 : i32, i32
  }
}

</mosaic_0001>

<bundles_post_ra>
// kernel: tpu_custom_call.1
= control target key start
LH: loop header
LB: loop body
LE: loop exit
PB: predicated region body
PF: predicated region fallthrough
CT: control target
= control target key end

     0   :  { %v400_v1 = vmov 0   ;;  %s484_s0 = inlined_call_operand.vmem [shape: f32[8,1], index: 0, kind: input, shape index: {}]   ;;  %s485_s1 = inlined_call_operand.vmem [shape: f32[1,16], index: 1, kind: input, shape index: {}]   ;;  %s486_s2 = inlined_call_operand.hbm [shape: f32[8,32], index: 2, kind: output, shape index: {}]  }
   0x1   :  { %v12_v0 = vld [vmem:[%s484_s0] sm:$0xff]  ;;  %372 = vset.pattern.permute.xlu0 %v400_v1 }
   0x2   :  { %v13_v2 = vmul.f32 5000.0, %v12_v0 }
   0x4   :  { %17 = vperm.xlu0 %372, %v13_v2  }
   0x5   :  { %7 = vsyncpa [#allocation3], 0  ;;  %v373_v3 = vld [vmem:[%s485_s1] ss:$0 sm:$0xff]  ;;  %v401_v17 = vmov 683565275  }
   0x6   :  { %v402_v19 = vmov 2475754826   ;;  %v403_v21 = vmov 2131351028   ;;  %v404_v23 = vmov 2102212464  }
   0x7   :  { %v405_v28 = vmov 920167782   ;;  %v406_v31 = vmov 1326507024   ;;  %s407_s0 = smov 16   ;;  %s408_s1 = smov [#allocation2]  }
   0x8   :  { %s346_s13 = sshll.u32 %s408_s1, 4  ;;  %s348_s16 = sshll.u32 %s486_s2, 4  ;;  %s347_s13 = int_to_ptr.vmem [resolvable:$true] %s346_s13  ;;  %s349_s16 = int_to_ptr.hbm [resolvable:$true] %s348_s16 }
  0x76   :  { %v18_v4 = vpop.permute.xlu0 %17 }
  0x77   :  { %v431_v5 = vmul.f32 %v373_v3, %v18_v4 }
  0x79   :  { %v27_v6 = vand.u32 2139095040, %v431_v5  ;;  %v24_v8 = vand.u32 2147483647, %v431_v5  ;;  %vm26_vm12 = vcmp.lt.s32.totalorder %v431_v5, 0 }
  0x7b   :  { %v28_v7 = vshrl.u32 %v27_v6, 23  ;;  %v31_v11 = vand.u32 8388607, %v24_v8  ;;  %vm25_vm13 = vcmp.le.f32.partialorder %v24_v8, 0.7853982 }
  0x7d   :  { %v357_v9 = vadd.s32 4294967169, %v28_v7  ;;  %v32_v14 = vor.u32 8388608, %v31_v11 }
  0x7f   :  { %v34_v10 = vadd.s32 1, %v357_v9  ;;  %v439_v33 = vshll.u32 %v32_v14, 8 }
  0x81   :  { %vm35_vm0 = vcmp.gt.s32.totalorder %v34_v10, 0  ;;  %v73_v45 = vand.u32 65535, %v439_v33  ;;  %v74_v47 = vshrl.u32 %v439_v33, 16 }
  0x82   :  { %v36_v12 = vsel %vm35_vm0, %v34_v10, 0 }
  0x83   :  { %v38_v13 = vand.u32 31, %v36_v12  ;;  %v437_v15 = vshrl.u32 %v36_v12, 5 }
  0x85   :  { %v39_v16 = vsub.s32 32, %v38_v13  ;;  %v41_v18 = vshll.u32 %v401_v17, %v38_v13  ;;  %v44_v20 = vshll.u32 %v402_v19, %v38_v13  ;;  %v47_v22 = vshll.u32 %v403_v21, %v38_v13 }
  0x86   :  { %v50_v24 = vshll.u32 %v404_v23, %v38_v13  ;;  %v53_v30 = vshll.u32 %v405_v28, %v38_v13  ;;  %vm56_vm1 = vcmp.lt.s32.totalorder %v437_v15, 1  ;;  %vm59_vm2 = vcmp.lt.s32.totalorder %v437_v15, 4 }
  0x87   :  { %v42_v25 = vshrl.u32 %v402_v19, %v39_v16  ;;  %v45_v26 = vshrl.u32 %v403_v21, %v39_v16  ;;  %v48_v27 = vshrl.u32 %v404_v23, %v39_v16  ;;  %v51_v29 = vshrl.u32 %v405_v28, %v39_v16 }
  0x88   :  { %v54_v32 = vshrl.u32 %v406_v31, %v39_v16  ;;  %vm58_vm3 = vcmp.lt.s32.totalorder %v437_v15, 3  ;;  %vm57_vm4 = vcmp.lt.s32.totalorder %v437_v15, 2  ;;  %v40_v10 = vshrl.u32 %v401_v17, %v39_v16 }
  0x89   :  { %v43_v34 = vor.u32 %v42_v25, %v41_v18  ;;  %v46_v35 = vor.u32 %v45_v26, %v44_v20  ;;  %v49_v36 = vor.u32 %v48_v27, %v47_v22  ;;  %v52_v37 = vor.u32 %v51_v29, %v50_v24 }
  0x8a   :  { %v55_v38 = vor.u32 %v54_v32, %v53_v30 }
  0x8b   :  { %v64_v39 = vsel %vm56_vm1, %v43_v34, %v46_v35  ;;  %v65_v40 = vsel %vm59_vm2, %v52_v37, 920167782  ;;  %v68_v41 = vsel %vm56_vm1, %v46_v35, %v49_v36  ;;  %v61_v6 = vsel %vm59_vm2, %v49_v36, 2102212464 }
  0x8c   :  { %v66_v42 = vsel %vm58_vm3, %v49_v36, %v65_v40  ;;  %v69_v43 = vsel %vm59_vm2, %v55_v38, 1326507024  ;;  %v60_v19 = vsel %vm56_vm1, %v40_v10, %v43_v34  ;;  %v62_v20 = vsel %vm58_vm3, %v46_v35, %v61_v6 }
  0x8d   :  { %v70_v44 = vsel %vm58_vm3, %v52_v37, %v69_v43  ;;  %v67_v46 = vsel %vm57_vm4, %v64_v39, %v66_v42  ;;  %v63_v17 = vsel %vm57_vm4, %v60_v19, %v62_v20 }
  0x8e   :  { %v71_v48 = vsel %vm57_vm4, %v68_v41, %v70_v44  ;;  %v97_v49 = vand.u32 65535, %v67_v46  ;;  %v98_v50 = vshrl.u32 %v67_v46, 16  ;;  %v117_v29 = vmul.u32 %v439_v33, %v63_v17 }
  0x8f   :  { %v75_v51 = vand.u32 65535, %v71_v48  ;;  %v76_v52 = vshrl.u32 %v71_v48, 16  ;;  %vm167_vm4 = vweird.f32 %v431_v5 }
  0x90   :  { %v100_v53 = vmul.u32 %v98_v50, %v73_v45  ;;  %v101_v54 = vmul.u32 %v97_v49, %v74_v47  ;;  %v99_v57 = vmul.u32 %v97_v49, %v73_v45  ;;  %v102_v61 = vmul.u32 %v98_v50, %v74_v47 }
  0x91   :  { %v78_v55 = vmul.u32 %v76_v52, %v73_v45  ;;  %v79_v56 = vmul.u32 %v75_v51, %v74_v47  ;;  %v77_v59 = vmul.u32 %v75_v51, %v73_v45  ;;  %v80_v62 = vmul.u32 %v76_v52, %v74_v47 }
  0x92   :  { %v103_v58 = vshll.u32 %v100_v53, 16  ;;  %v105_v63 = vshll.u32 %v101_v54, 16  ;;  %v104_v14 = vshrl.u32 %v100_v53, 16  ;;  %v106_v23 = vshrl.u32 %v101_v54, 16 }
  0x93   :  { %v81_v60 = vshll.u32 %v78_v55, 16  ;;  %v83_v2 = vshll.u32 %v79_v56, 16  ;;  %v82_v21 = vshrl.u32 %v78_v55, 16  ;;  %v84_v25 = vshrl.u32 %v79_v56, 16 }
  0x94   :  { %vm107_vm5 = vc.u32 %v99_v57, %v103_v58  ;;  %v109_v0 = vadd.s32 %v103_v58, %v99_v57 }
  0x95   :  { %vm85_vm6 = vc.u32 %v77_v59, %v81_v60  ;;  %v87_v3 = vadd.s32 %v81_v60, %v77_v59  ;;  %v108_v4 = vsel %vm107_vm5, 1, %v400_v1  ;;  %vm337_vm5 = vcmask 130048  }
  0x96   :  { %v86_v7 = vsel %vm85_vm6, 1, %v400_v1  ;;  %v110_v9 = vadd.s32 %v108_v4, %v102_v61  ;;  %vm111_vm7 = vc.u32 %v109_v0, %v105_v63  ;;  %vm339_vm6 = vcmask 261120  }
  0x97   :  { %v88_v11 = vadd.s32 %v86_v7, %v80_v62  ;;  %vm89_vm8 = vc.u32 %v87_v3, %v83_v2  ;;  %v112_v12 = vsel %vm111_vm7, 1, %v400_v1 }
  0x98   :  { %v90_v13 = vsel %vm89_vm8, 1, %v400_v1  ;;  %v114_v18 = vadd.s32 %v112_v12, %v110_v9  ;;  %v113_v1 = vadd.s32 %v109_v0, %v105_v63 }
  0x99   :  { %v92_v22 = vadd.s32 %v90_v13, %v88_v11 }
  0x9a   :  { %v115_v24 = vadd.s32 %v114_v18, %v104_v14 }
  0x9b   :  { %v93_v16 = vadd.s32 %v92_v22, %v82_v21 }
  0x9c   :  { %v116_v26 = vadd.s32 %v115_v24, %v106_v23 }
  0x9d   :  { %v94_v27 = vadd.s32 %v93_v16, %v84_v25 }
  0x9e   :  { %v120_v28 = vadd.s32 1, %v116_v26 }
  0x9f   :  { %vm119_vm9 = vc.u32 %v94_v27, %v113_v1  ;;  %v118_v41 = vadd.s32 %v113_v1, %v94_v27 }
  0xa0   :  { %v121_v30 = vsel %vm119_vm9, %v120_v28, %v116_v26 }
  0xa1   :  { %v122_v31 = vadd.s32 %v121_v30, %v117_v29 }
  0xa3   :  { %v123_v32 = vadd.s32 536870912, %v122_v31 }
  0xa5   :  { %v124_v34 = vshrl.u32 %v123_v32, 30 }
  0xa7   :  { %v125_v35 = vshll.u32 %v124_v34, 30  ;;  %v148_v53 = vsub.s32 4, %v124_v34 }
  0xa9   :  { %v126_v36 = vsub.s32 %v122_v31, %v125_v35  ;;  %v149_v57 = vsel %vm26_vm12, %v148_v53, %v124_v34 }
  0xaa   :  { %v151_v60 = vsel %vm25_vm13, 0, %v149_v57 }
  0xab   :  { %vm127_vm10 = vcmp.lt.s32.totalorder %v126_v36, 0  ;;  %v128_v37 = vsub.s32 0, %v126_v36  ;;  %v168_v2 = vadd.s32 3, %v151_v60  ;;  %v323_v11 = vand.u32 3, %v151_v60 }
  0xad   :  { %v129_v38 = vsel %vm127_vm10, %v128_v37, %v126_v36  ;;  %v169_v9 = vand.u32 3, %v168_v2  ;;  %vm324_vm0 = vcmp.lt.s32.totalorder %v323_v11, 2  ;;  %vm325_vm1 = vcmp.eq.s32.totalorder %v323_v11, 0 }
  0xae   :  { %v130_v39 = vclz %v129_v38  ;;  %vm328_vm2 = vcmp.eq.s32.totalorder %v323_v11, 2 }
  0xaf   :  { %vm174_vm14 = vcmp.eq.s32.totalorder %v169_v9, 2  ;;  %vm171_vm15 = vcmp.eq.s32.totalorder %v169_v9, 0  ;;  %vm170_vm3 = vcmp.lt.s32.totalorder %v169_v9, 2 }
  0xb0   :  { %v358_v40 = vadd.s32 4294967294, %v130_v39 }
  0xb2   :  { %vm359_vm11 = vcmp.lt.s32.totalorder %v358_v40, 0 }
  0xb3   :  { %v133_v15 = vsel %vm359_vm11, 0, %v358_v40 }
  0xb4   :  { %v134_v42 = vsub.s32 32, %v133_v15  ;;  %v138_v43 = vsub.s32 4294967266, %v133_v15  ;;  %v135_v44 = vshll.u32 %v126_v36, %v133_v15 }
  0xb6   :  { %v136_v45 = vshrl.u32 %v118_v41, %v134_v42  ;;  %v139_v33 = vadd.s32 127, %v138_v43 }
  0xb8   :  { %v137_v46 = vor.u32 %v136_v45, %v135_v44  ;;  %v140_v47 = vshll.u32 %v139_v33, 23 }
  0xba   :  { %v141_v48 = vor.u32 4788187, %v140_v47  ;;  %v144_v50 = vcvt.s32.f32 %v137_v46 }
  0xbc   :  { %v142_v49 = vand.u32 2147483647, %v141_v48 }
  0xbe   :  { %v145_v51 = vmul.f32 %v144_v50, %v142_v49 }
  0xc0   :  { %v146_v52 = vxor.u32 2147483648, %v145_v51 }
  0xc2   :  { %v147_v54 = vsel %vm26_vm12, %v146_v52, %v145_v51 }
  0xc3   :  { %v150_v55 = vsel %vm25_vm13, %v431_v5, %v147_v54 }
  0xc4   :  { %v152_v56 = vmul.f32 %v150_v55, %v150_v55 }
  0xc6   :  { %v153_v58 = vmul.f32 -0.001358992, %v152_v56  ;;  %v160_v59 = vmul.f32 -0.00019511016, %v152_v56 }
  0xc8   :  { %v154_v61 = vadd.f32 0.041655596, %v153_v58  ;;  %v161_v62 = vadd.f32 0.008332121, %v160_v59 }
  0xca   :  { %v155_v63 = vmul.f32 %v154_v61, %v152_v56  ;;  %v162_v0 = vmul.f32 %v161_v62, %v152_v56 }
  0xcc   :  { %v156_v3 = vadd.f32 -0.4999988, %v155_v63  ;;  %v163_v4 = vadd.f32 -0.16666654, %v162_v0 }
  0xce   :  { %v157_v6 = vmul.f32 %v156_v3, %v152_v56  ;;  %v164_v7 = vmul.f32 %v163_v4, %v152_v56 }
  0xd0   :  { %v158_v10 = vadd.f32 1.0, %v157_v6  ;;  %v165_v8 = vadd.f32 1.0, %v164_v7 }
  0xd2   :  { %v166_v12 = vmul.f32 %v165_v8, %v150_v55  ;;  %v175_v13 = vxor.u32 2147483648, %v158_v10 }
  0xd4   :  { %v172_v14 = vxor.u32 2147483648, %v166_v12  ;;  %v176_v18 = vsel %vm174_vm14, %v175_v13, %v166_v12  ;;  %v330_v20 = vsel %vm328_vm2, %v175_v13, %v166_v12 }
  0xd6   :  { %v327_v19 = vsel %vm325_vm1, %v158_v10, %v172_v14  ;;  %v173_v21 = vsel %vm171_vm15, %v158_v10, %v172_v14 }
  0xd7   :  { %v331_v22 = vsel %vm324_vm0, %v327_v19, %v330_v20  ;;  %v177_v23 = vsel %vm170_vm3, %v173_v21, %v176_v18 }
  0xd8   :  { %v332_v24 = vsel %vm167_vm4, nan, %v331_v22  ;;  %v178_v25 = vsel %vm167_vm4, nan, %v177_v23 }
  0xd9   :  { %334 = vrot.lane.b32.xlu0 %v332_v24, %s407_s0 }
 0x14b   :  { %v335_v16 = vpop.permute.xlu0 %334 }
 0x14c   :  { %v338_v17 = vsel %vm337_vm5, %v178_v25, %v335_v16 }
 0x14d   :  { %340 = vst.msk [vmem:[#allocation2] sm:$0xff] %vm339_vm6, %v338_v17 }
 0x14e   :  { %351 = dma.vmem_to_hbm [thread:$0]  %s347_s13, 128, %s349_s16, [#allocation3]  }
 0x14f   :  { %398 = dma.done.wait [#allocation3], 128  }
 0x150   :  { %399 = vsyncadd [#allocation3], 4294967168 }
 0x151   :  { %356 = vsyncpa [#allocation3], 1 }

</bundles_post_ra>
